<compile_context>
chip_gen: v7x
topology: tpu7x:2x2x1
jax: 0.10.0
libtpu: 0.0.40
codegen_flags: <defaults>
</compile_context>

<pallas_src>
import jax
import jax.numpy as jnp
from jax.experimental import pallas as pl
from jax.experimental.pallas import tpu as pltpu

LANES = 128
TARGET_BLOCK_BYTES = 4 * 1024 * 1024   # ~4 MiB per pipelined buffer
MIN_BLOCKS_FOR_SPLIT = 8               # >= 4 grid steps per v7x TensorCore
MIN_BYTES_FOR_SPLIT = 2 * 1024 * 1024  # only force the split for slabs >= 2 MiB


def _erf_kernel(x_ref, o_ref):
    # Elementwise erf on the current VMEM tile. Compute in f32 and cast back
    # to the output dtype (no-op for f32 in/out).
    x = x_ref[...].astype(jnp.float32)
    o_ref[...] = jax.lax.erf(x).astype(o_ref.dtype)


def _round_up(a: int, b: int) -> int:
    return pl.cdiv(a, b) * b


def erf_pallas(x: jax.Array, *, target_block_bytes: int = TARGET_BLOCK_BYTES) -> jax.Array:
    """Elementwise erf via a Pallas TPU kernel.

    Floating inputs keep their dtype; integer/bool inputs promote to float32
    (matching torch.special.erf's type promotion).
    """
    orig_shape = x.shape
    in_dtype = x.dtype
    if jnp.issubdtype(in_dtype, jnp.floating):
        out_dtype = in_dtype
    else:
        # torch.special.erf promotes integer/bool inputs to floating point.
        out_dtype = jnp.float32
        if in_dtype == jnp.bool_:
            x = x.astype(jnp.int32)   # avoid 1-bit tiles in VMEM
            in_dtype = jnp.int32

    n = x.size
    if n == 0:
        return jnp.zeros(orig_shape, out_dtype)

    flat = x.reshape(-1)
    aligned = (n % LANES) == 0
    if aligned:
        # Fast path: pure reshape, zero extra HBM traffic.
        rows = n // LANES
        x2d = flat.reshape(rows, LANES)
    else:
        # Pad only a <128-element sliver (erf(0) == 0; sliced off below).
        n_pad = _round_up(n, LANES)
        rows = n_pad // LANES
        tail = jnp.zeros((n_pad - n,), dtype=in_dtype)
        x2d = jnp.concatenate([flat, tail]).reshape(rows, LANES)

    in_item = jnp.dtype(in_dtype).itemsize
    out_item = jnp.dtype(out_dtype).itemsize
    # Packed-sublane multiple for the block shape: f32 -> 8, bf16 -> 16, int8 -> 32.
    sub = max(8, 32 // max(in_item, 1), 32 // max(out_item, 1))

    # Constant-byte block budget (scaled by dtype width), never larger than the slab.
    bytes_per_row = LANES * max(in_item, out_item)
    budget_rows = max(sub, (target_block_bytes // bytes_per_row) // sub * sub)
    tr = min(budget_rows, _round_up(rows, sub))

    # Keep >= MIN_BLOCKS_FOR_SPLIT grid steps for large slabs so each v7x
    # TensorCore still has multiple steps to double-buffer.
    total_bytes = rows * LANES * max(in_item, out_item)
    if total_bytes >= MIN_BYTES_FOR_SPLIT:
        tr = min(tr, _round_up(pl.cdiv(rows, MIN_BLOCKS_FOR_SPLIT), sub))
    tr = max(tr, sub)

    # No row padding: Pallas masks the boundary block when tr doesn't divide rows.
    n_blocks = pl.cdiv(rows, tr)

    out2d = pl.pallas_call(
        _erf_kernel,
        out_shape=jax.ShapeDtypeStruct((rows, LANES), out_dtype),
        grid_spec=pltpu.PrefetchScalarGridSpec(
            num_scalar_prefetch=0,
            grid=(n_blocks,),
            in_specs=[pl.BlockSpec((tr, LANES), lambda i: (i, 0))],
            out_specs=pl.BlockSpec((tr, LANES), lambda i: (i, 0)),
        ),
        compiler_params=pltpu.CompilerParams(
            dimension_semantics=("parallel",),
            vmem_limit_bytes=32 * 1024 * 1024,
        ),
        cost_estimate=pl.CostEstimate(
            # lax.erf(f32) lowers to a ~20-flop rational polynomial per element.
            flops=20 * rows * LANES,
            transcendentals=0,
            bytes_accessed=rows * LANES * (in_item + out_item),
        ),
    )(x2d)

    if aligned:
        return out2d.reshape(orig_shape)
    return out2d.reshape(-1)[:n].reshape(orig_shape)


if __name__ == "__main__":
    key = jax.random.PRNGKey(0)

    # (*) -> (*): small NCHW-like tensor (aligned, copy-free path).
    x = jax.random.normal(key, (2, 4, 16, 16), dtype=jnp.float32)
    out = erf_pallas(x)
    jax.block_until_ready(out)
    ref = jax.lax.erf(x)
    assert out.shape == x.shape and out.dtype == x.dtype
    assert jnp.allclose(out, ref, atol=1e-6, rtol=1e-6)

    # Ragged size (exercises the sliver-pad tail path).
    key2 = jax.random.fold_in(key, 1)
    x2 = jax.random.normal(key2, (3, 7, 5), dtype=jnp.float32)
    out2 = erf_pallas(x2)
    jax.block_until_ready(out2)
    ref2 = jax.lax.erf(x2)
    assert out2.shape == x2.shape and out2.dtype == x2.dtype
    assert jnp.allclose(out2, ref2, atol=1e-6, rtol=1e-6)

    # bf16 path (packed sublanes + in-kernel f32 upcast).
    key3 = jax.random.fold_in(key, 2)
    x3 = jax.random.normal(key3, (2, 4, 16, 16), dtype=jnp.bfloat16)
    out3 = erf_pallas(x3)
    jax.block_until_ready(out3)
    ref3 = jax.lax.erf(x3.astype(jnp.float32)).astype(jnp.bfloat16)
    assert out3.shape == x3.shape and out3.dtype == x3.dtype
    assert jnp.allclose(
        out3.astype(jnp.float32), ref3.astype(jnp.float32), atol=2e-2, rtol=2e-2
    )

    # Integer input promotes to float32 (torch.special.erf semantics).
    key4 = jax.random.fold_in(key, 3)
    x4 = jax.random.randint(key4, (4, 16), -3, 4, dtype=jnp.int32)
    out4 = erf_pallas(x4)
    jax.block_until_ready(out4)
    ref4 = jax.lax.erf(x4.astype(jnp.float32))
    assert out4.shape == x4.shape and out4.dtype == jnp.float32
    assert jnp.allclose(out4, ref4, atol=1e-6, rtol=1e-6)

    # Aligned multi-block slab (exercises the >=8-step split + boundary-block
    # masking on the last grid step, no padding or copies).
    key5 = jax.random.fold_in(key, 4)
    x5 = jax.random.normal(key5, (40, 129, 128), dtype=jnp.float32)
    out5 = erf_pallas(x5)
    jax.block_until_ready(out5)
    ref5 = jax.lax.erf(x5)
    assert out5.shape == x5.shape and out5.dtype == x5.dtype
    assert jnp.allclose(out5, ref5, atol=1e-6, rtol=1e-6)

    print("KERNEL_OK")
</pallas_src>

<mosaic_0001>
module attributes {stable_mosaic.version = 11 : i64} {
  func.func @_erf_kernel(%arg0: i32, %arg1: memref<16x128xf32, #tpu.memory_space<vmem>>, %arg2: memref<16x128xf32, #tpu.memory_space<vmem>>) attributes {dimension_semantics = [#tpu.dimension_semantics<parallel>], iteration_bounds = array<i64: 1>, scalar_prefetch = 0 : i64, scratch_operands = 0 : i64, tpu.core_type = #tpu.core_type<tc>, window_params = [{transform_indices = @transform_0, window_bounds = array<i64: 16, 128>}, {transform_indices = @transform_1, window_bounds = array<i64: 16, 128>}]} {
    %c0 = arith.constant 0 : index
    %c0_0 = arith.constant 0 : index
    %0 = vector.load %arg1[%c0, %c0_0] : memref<16x128xf32, #tpu.memory_space<vmem>>, vector<16x128xf32>
    %1 = math.erf %0 : vector<16x128xf32>
    %c0_1 = arith.constant 0 : index
    %c0_2 = arith.constant 0 : index
    %2 = vector.load %arg2[%c0_1, %c0_2] : memref<16x128xf32, #tpu.memory_space<vmem>>, vector<16x128xf32>
    tpu.vector_store %arg2[%c0_1, %c0_2], %1 {strides = array<i32>} : memref<16x128xf32, #tpu.memory_space<vmem>>, vector<16x128xf32>,
    return
  }
  func.func @transform_0(%arg0: i32) -> (i32, i32) {
    %c0_i32 = arith.constant 0 : i32
    %c0_i32_0 = arith.constant 0 : i32
    return %arg0, %c0_i32 : i32, i32
  }
  func.func @transform_1(%arg0: i32) -> (i32, i32) {
    %c0_i32 = arith.constant 0 : i32
    %c0_i32_0 = arith.constant 0 : i32
    return %arg0, %c0_i32 : i32, i32
  }
}

</mosaic_0001>

<bundles_post_ra>
// kernel: tpu_custom_call.1
= control target key start
LH: loop header
LB: loop body
LE: loop exit
PB: predicated region body
PF: predicated region fallthrough
CT: control target
= control target key end

     0   :  { %6 = vsyncpa [#allocation3], 0  ;;  %s146_s0 = inlined_call_operand.hbm [shape: f32[16,128], index: 0, kind: input, shape index: {}]   ;;  %s147_s1 = inlined_call_operand.hbm [shape: f32[16,128], index: 1, kind: output, shape index: {}]  }
   0x1   :  { %7 = vsyncpa [#allocation4], 0  ;;  %s102_s6 = smov [#allocation2]   ;;  %s54_s10 = scalar_lea.hbm %s146_s0, 256 }
   0x2   :  { %s13_s7 = sshll.u32 %s102_s6, 4  ;;  %p55_p0 = scmp.ne.s32.totalorder %s146_s0, %s54_s10  ;;  %s14_s7 = int_to_ptr.vmem [resolvable:$true] %s13_s7 }
   0x3   :  { %p58_p1 = scmp.lt.u32.totalorder %s54_s10, %s146_s0 }
   0x5   :  { %p60_p2 = pnand %p58_p1, %p55_p0 }
   0x7   :  { %63 = shalt.err (!%p60_p2)
}
   0x8   :  { %s64_s15 = scalar_lea.vmem %s14_s7, 256  ;;  %p69_p4 = scmp.lt.s32.totalorder %s14_s7, %s14_s7 }
   0x9   :  { %p65_p3 = scmp.ne.s32.totalorder %s14_s7, %s64_s15  ;;  %p70_p5 = scmp.lt.s32.totalorder %s64_s15, %s64_s15 }
   0xb   :  { %p71_p6 = por %p70_p5, %p69_p4 }
   0xd   :  { %p72_p7 = pnand %p71_p6, %p65_p3 }
   0xf   :  { %75 = shalt.err (!%p72_p7)
}
  0x10   :  { %s103_s16 = smov 128   ;;  %s104_s17 = smov 8  }
  0x11   :  { %19 = dma.hbm_to_vmem [thread:$0]  %s146_s0, 256, %s14_s7, [#allocation3], %s103_s16, %s103_s16, %s104_s17  }
  0x12   :  { %98 = dma.done.wait [#allocation3], 256  }
  0x13   :  { %99 = vsyncadd [#allocation3], 4294967040  ;;  %v23_v0 = vld [vmem:[#allocation2] sm:$0xff]  ;;  %v24_v1 = vld [vmem:[#allocation2 + $0x8] sm:$0xff]  ;;  %s105_s20 = smov [#allocation5]  }
  0x14   :  { %50 = verf.f32 %v23_v0  ;;  %s34_s21 = sshll.u32 %s105_s20, 4  ;;  %s35_s21 = int_to_ptr.vmem [resolvable:$true] %s34_s21 }
  0x15   :  { %52 = verf.f32 %v24_v1  ;;  %s76_s22 = scalar_lea.vmem %s35_s21, 256  ;;  %p81_p9 = scmp.lt.s32.totalorder %s35_s21, %s35_s21 }
  0x16   :  { %p77_p8 = scmp.ne.s32.totalorder %s35_s21, %s76_s22  ;;  %p82_p10 = scmp.lt.s32.totalorder %s76_s22, %s76_s22 }
  0x18   :  { %p83_p11 = por %p82_p10, %p81_p9 }
  0x1a   :  { %p84_p12 = pnand %p83_p11, %p77_p8 }
  0x1e   :  { %v51_v2 = vpop.eup %50 }
  0x1f   :  { %v53_v3 = vpop.eup %52  ;;  %27 = vst [vmem:[#allocation5] sm:$0xff] %v51_v2 }
  0x20   :  { %28 = vst [vmem:[#allocation5 + $0x8] sm:$0xff] %v53_v3 }
  0x21   :  { %87 = shalt.err (!%p84_p12)
}
  0x22   :  { %s88_s24 = scalar_lea.hbm %s147_s1, 256 }
  0x23   :  { %p89_p13 = scmp.ne.s32.totalorder %s147_s1, %s88_s24  ;;  %p92_p0 = scmp.lt.u32.totalorder %s88_s24, %s147_s1 }
  0x25   :  { %p94_p1 = pnand %p92_p0, %p89_p13 }
  0x27   :  { %97 = shalt.err (!%p94_p1)
}
  0x28   :  { %40 = dma.vmem_to_hbm [thread:$0]  %s35_s21, 256, %s147_s1, [#allocation4], %s103_s16, %s103_s16, %s104_s17  }
  0x29   :  { %100 = dma.done.wait [#allocation4], 256  }
  0x2a   :  { %101 = vsyncadd [#allocation4], 4294967040 }
  0x2b   :  { %44 = vsyncpa [#allocation3], 1 }
  0x2c   :  { %45 = vsyncpa [#allocation4], 1 }

</bundles_post_ra>
